<compile_context>
chip_gen: v6e
topology: v6e:2x2x1
jax: 0.10.0
libtpu: 0.0.40
codegen_flags: <defaults>
</compile_context>

<pallas_src>
import jax
import jax.numpy as jnp
import numpy as np
from jax import lax
from jax.experimental import pallas as pl
from jax.experimental.pallas import tpu as pltpu


# ---------------------------------------------------------------------------
# Trace-time parameter construction (mirrors the PyTorch __init__).
# ---------------------------------------------------------------------------
def _filter_taps_1d(kernel_size=7, sigma=1.0, mode="average"):
    """1-D taps g such that the 2-D depthwise filter is outer(g, g)."""
    if mode == "average":
        return np.full((kernel_size,), 1.0 / kernel_size, dtype=np.float64)
    if mode == "gaussian":
        ax = np.linspace(-(kernel_size - 1) / 2.0, (kernel_size - 1) / 2.0, kernel_size)
        g = np.exp(-0.5 * np.square(ax) / float(sigma) ** 2)
        return g / g.sum()
    raise ValueError(mode)


def _reflect_band_matrix(n, taps):
    """(n, n) matrix applying the 1-D filter `taps` with reflect padding."""
    k = len(taps)
    p = k // 2
    a = np.zeros((n, n), dtype=np.float64)
    for i in range(n):
        for d in range(k):
            src = i + d - p
            if src < 0:
                src = -src
            elif src >= n:
                src = 2 * n - 2 - src
            a[i, src] += taps[d]
    return a


def _round_up(v, m):
    return ((v + m - 1) // m) * m


# Deterministic "PCA" 1x1 conv weight (Ohta color basis).
_W_PCA = (
    (1.0 / 3.0, 1.0 / 3.0, 1.0 / 3.0),
    (0.5, 0.0, -0.5),
    (-0.25, 0.5, -0.25),
)


# ---------------------------------------------------------------------------
# Pallas kernel (PCA weights baked in as trace-time constants via closure).
# ---------------------------------------------------------------------------
def _make_ctd_kernel(C, n_rows, r_pad, s_pad, w_pca):
    n_images = n_rows // C

    def kernel(x_ref, mt_ref, mean_ref, delta_ref, pqr_ref):
        x = x_ref[...].astype(jnp.float32)                     # (r_pad, s_pad)

        # Reflect-padded separable KxK filter == one banded matmul on the MXU.
        mean = jnp.dot(x, mt_ref[...], preferred_element_type=jnp.float32)
        delta = x - mean

        mean_ref[...] = mean.astype(mean_ref.dtype)            # full, unmasked-lane stores
        delta_ref[...] = delta.astype(delta_ref.dtype)

        # 1x1 "PCA" channel mix: constant-weighted adds on the VPU (exact f32).
        for b in range(n_images):
            base = b * C
            for o in range(C):
                acc = None
                for i in range(C):
                    w = w_pca[o][i]
                    if w == 0.0:
                        continue
                    row = delta[base + i:base + i + 1, :]      # (1, s_pad)
                    term = row if w == 1.0 else w * row
                    acc = term if acc is None else acc + term
                if acc is None:
                    acc = jnp.zeros((1, s_pad), jnp.float32)
                pqr_ref[base + o:base + o + 1, :] = acc.astype(pqr_ref.dtype)

        if n_rows < r_pad:                                     # zero the alignment-pad rows
            pqr_ref[n_rows:r_pad, :] = jnp.zeros((r_pad - n_rows, s_pad), pqr_ref.dtype)

    return kernel


# ---------------------------------------------------------------------------
# Wrapper.
# ---------------------------------------------------------------------------
def color_texture_decomposition(x, average_size=7, sigma=1.0, mode="average", w_pca=None):
    N, C, H, W = x.shape
    if w_pca is None:
        w_pca = _W_PCA
    assert C == len(w_pca), "module is defined for 3 color channels"
    p = average_size // 2
    assert H > p and W > p, "reflect padding requires H, W > kernel_size // 2"

    S = H * W
    S_pad = _round_up(S, 128)       # lane-dense last dim
    R = N * C
    R_pad = _round_up(R, 8)         # sublane-aligned rows

    if S_pad > 1024:
        # TODO(synk): large images need a haloed row-tiled separable-matmul
        # path (A @ x_tile @ B^T); the dense kron matrix only suits small H*W.
        raise NotImplementedError("image too large for the dense kron-filter path")

    # Reflect-padded separable filter folded into one (S, S) matrix.
    taps = _filter_taps_1d(average_size, sigma, mode)
    a_v = _reflect_band_matrix(H, taps)
    a_h = _reflect_band_matrix(W, taps)
    m = np.kron(a_v, a_h)                                   # mean_flat = m @ x_flat
    mt_np = np.zeros((S_pad, S_pad), dtype=np.float32)
    mt_np[:S, :S] = m.T
    mt = jnp.asarray(mt_np)

    # Lane-dense input slab.
    x2 = x.reshape(R, S)
    if R_pad != R or S_pad != S:
        x2 = jnp.pad(x2, ((0, R_pad - R), (0, S_pad - S)))

    kernel = _make_ctd_kernel(
        C, R, R_pad, S_pad, tuple(tuple(float(v) for v in row) for row in w_pca))

    slab = jax.ShapeDtypeStruct((R_pad, S_pad), x.dtype)
    io_spec = pl.BlockSpec((R_pad, S_pad), lambda g: (0, 0))
    mt_spec = pl.BlockSpec((S_pad, S_pad), lambda g: (0, 0))

    itemsize = x.dtype.itemsize
    cost = pl.CostEstimate(
        flops=int(2 * R_pad * S_pad * S_pad + R_pad * S_pad + 2 * R * C * S_pad),
        transcendentals=0,
        bytes_accessed=int(4 * R_pad * S_pad * itemsize + S_pad * S_pad * 4),
    )
    # VMEM: double-buffered inputs/outputs + live f32 values + headroom.
    vmem_needed = (2 * (S_pad * S_pad * 4 + 4 * R_pad * S_pad * itemsize)
                   + 6 * R_pad * S_pad * 4 + (1 << 20))
    vmem_limit = int(min(max(vmem_needed, 16 << 20), 48 << 20))

    mean2, delta2, pqr2 = pl.pallas_call(
        kernel,
        out_shape=(slab, slab, slab),
        grid=(1,),
        in_specs=[io_spec, mt_spec],
        out_specs=(io_spec, io_spec, io_spec),
        compiler_params=pltpu.CompilerParams(
            dimension_semantics=("arbitrary",),
            vmem_limit_bytes=vmem_limit,
        ),
        cost_estimate=cost,
    )(x2, mt)

    def unflatten(t):
        return t[:R, :S].reshape(N, C, H, W)

    return unflatten(mean2), unflatten(delta2), unflatten(pqr2)


# ---------------------------------------------------------------------------
# Pure-JAX reference (independent check of the kernel).
# ---------------------------------------------------------------------------
def reference(x, average_size=7, sigma=1.0, mode="average"):
    C = x.shape[1]
    K = average_size
    p = K // 2
    taps = _filter_taps_1d(average_size, sigma, mode)
    w2d = jnp.asarray(np.outer(taps, taps), x.dtype)
    xpad = jnp.pad(x, ((0, 0), (0, 0), (p, p), (p, p)), mode="reflect")
    wdep = jnp.broadcast_to(w2d, (C, 1, K, K))
    mean = lax.conv_general_dilated(
        xpad, wdep, window_strides=(1, 1), padding="VALID",
        feature_group_count=C,
        dimension_numbers=("NCHW", "OIHW", "NCHW"),
        precision=lax.Precision.HIGHEST,
    )
    delta = x - mean
    w_pca = jnp.asarray(np.asarray(_W_PCA), x.dtype)
    pqr = jnp.einsum("oi,nihw->nohw", w_pca, delta, precision=lax.Precision.HIGHEST)
    return mean, delta, pqr


if __name__ == "__main__":
    key = jax.random.PRNGKey(0)
    x = jax.random.normal(key, (2, 3, 16, 16), dtype=jnp.float32)

    for mode in ("average", "gaussian"):
        outs = color_texture_decomposition(x, average_size=7, sigma=1.0, mode=mode)
        jax.block_until_ready(outs)
        refs = reference(x, average_size=7, sigma=1.0, mode=mode)
        for got, want in zip(outs, refs):
            # Tolerance leaves headroom for possible bf16-pass MXU rounding of
            # the f32 filter matmul; real layout/indexing bugs are >> 1e-2.
            assert jnp.allclose(got, want, atol=2e-3, rtol=2e-3), f"mismatch in mode={mode}"

    print("KERNEL_OK")
</pallas_src>

<mosaic_0001>
module attributes {stable_mosaic.version = 11 : i64} {
  func.func @kernel(%arg0: i32, %arg1: memref<8x256xf32, #tpu.memory_space<vmem>>, %arg2: memref<256x256xf32, #tpu.memory_space<vmem>>, %arg3: memref<8x256xf32, #tpu.memory_space<vmem>>, %arg4: memref<8x256xf32, #tpu.memory_space<vmem>>, %arg5: memref<8x256xf32, #tpu.memory_space<vmem>>) attributes {dimension_semantics = [#tpu.dimension_semantics<arbitrary>], iteration_bounds = array<i64: 1>, scalar_prefetch = 0 : i64, scratch_operands = 0 : i64, tpu.core_type = #tpu.core_type<tc>, window_params = [{pipeline_mode = #tpu.pipeline_mode<synchronous>, transform_indices = @transform_0, window_bounds = array<i64: 8, 256>}, {pipeline_mode = #tpu.pipeline_mode<synchronous>, transform_indices = @transform_1, window_bounds = array<i64: 256, 256>}, {pipeline_mode = #tpu.pipeline_mode<synchronous>, transform_indices = @transform_2, window_bounds = array<i64: 8, 256>}, {pipeline_mode = #tpu.pipeline_mode<synchronous>, transform_indices = @transform_3, window_bounds = array<i64: 8, 256>}, {pipeline_mode = #tpu.pipeline_mode<synchronous>, transform_indices = @transform_4, window_bounds = array<i64: 8, 256>}]} {
    %c0 = arith.constant 0 : index
    %c0_0 = arith.constant 0 : index
    %0 = vector.load %arg1[%c0, %c0_0] : memref<8x256xf32, #tpu.memory_space<vmem>>, vector<8x256xf32>
    %c0_1 = arith.constant 0 : index
    %c0_2 = arith.constant 0 : index
    %1 = vector.load %arg2[%c0_1, %c0_2] : memref<256x256xf32, #tpu.memory_space<vmem>>, vector<256x256xf32>
    %cst = arith.constant dense<0.000000e+00> : vector<8x256xf32>
    %2 = tpu.matmul %0, %1, %cst {dimension_numbers = #tpu.dot_dimension_numbers<[1], [0], [0], [1], [0, 0, 1, 1], [], []>} : vector<8x256xf32>, vector<256x256xf32>, vector<8x256xf32> -> vector<8x256xf32>
    %3 = arith.subf %0, %2 : vector<8x256xf32>
    %c0_3 = arith.constant 0 : index
    %c0_4 = arith.constant 0 : index
    %4 = vector.load %arg3[%c0_3, %c0_4] : memref<8x256xf32, #tpu.memory_space<vmem>>, vector<8x256xf32>
    tpu.vector_store %arg3[%c0_3, %c0_4], %2 {strides = array<i32>} : memref<8x256xf32, #tpu.memory_space<vmem>>, vector<8x256xf32>,
    %c0_5 = arith.constant 0 : index
    %c0_6 = arith.constant 0 : index
    %5 = vector.load %arg4[%c0_5, %c0_6] : memref<8x256xf32, #tpu.memory_space<vmem>>, vector<8x256xf32>
    tpu.vector_store %arg4[%c0_5, %c0_6], %3 {strides = array<i32>} : memref<8x256xf32, #tpu.memory_space<vmem>>, vector<8x256xf32>,
    %6 = vector.extract_strided_slice %3 {offsets = [0, 0], sizes = [1, 256], strides = [1, 1]} : vector<8x256xf32> to vector<1x256xf32>
    %cst_7 = arith.constant 0.333333343 : f32
    %7 = vector.broadcast %cst_7 : f32 to vector<1x256xf32>
    %8 = arith.mulf %7, %6 : vector<1x256xf32>
    %9 = vector.extract_strided_slice %3 {offsets = [1, 0], sizes = [1, 256], strides = [1, 1]} : vector<8x256xf32> to vector<1x256xf32>
    %cst_8 = arith.constant 0.333333343 : f32
    %10 = vector.broadcast %cst_8 : f32 to vector<1x256xf32>
    %11 = arith.mulf %10, %9 : vector<1x256xf32>
    %12 = arith.addf %8, %11 : vector<1x256xf32>
    %13 = vector.extract_strided_slice %3 {offsets = [2, 0], sizes = [1, 256], strides = [1, 1]} : vector<8x256xf32> to vector<1x256xf32>
    %cst_9 = arith.constant 0.333333343 : f32
    %14 = vector.broadcast %cst_9 : f32 to vector<1x256xf32>
    %15 = arith.mulf %14, %13 : vector<1x256xf32>
    %16 = arith.addf %12, %15 : vector<1x256xf32>
    %c0_10 = arith.constant 0 : index
    %c0_11 = arith.constant 0 : index
    %17 = vector.load %arg5[%c0_10, %c0_11] : memref<8x256xf32, #tpu.memory_space<vmem>>, vector<1x256xf32>
    tpu.vector_store %arg5[%c0_10, %c0_11], %16 {strides = array<i32>} : memref<8x256xf32, #tpu.memory_space<vmem>>, vector<1x256xf32>,
    %18 = vector.extract_strided_slice %3 {offsets = [0, 0], sizes = [1, 256], strides = [1, 1]} : vector<8x256xf32> to vector<1x256xf32>
    %cst_12 = arith.constant 5.000000e-01 : f32
    %19 = vector.broadcast %cst_12 : f32 to vector<1x256xf32>
    %20 = arith.mulf %19, %18 : vector<1x256xf32>
    %21 = vector.extract_strided_slice %3 {offsets = [2, 0], sizes = [1, 256], strides = [1, 1]} : vector<8x256xf32> to vector<1x256xf32>
    %cst_13 = arith.constant -5.000000e-01 : f32
    %22 = vector.broadcast %cst_13 : f32 to vector<1x256xf32>
    %23 = arith.mulf %22, %21 : vector<1x256xf32>
    %24 = arith.addf %20, %23 : vector<1x256xf32>
    %c1 = arith.constant 1 : index
    %c0_14 = arith.constant 0 : index
    %25 = vector.load %arg5[%c1, %c0_14] : memref<8x256xf32, #tpu.memory_space<vmem>>, vector<1x256xf32>
    tpu.vector_store %arg5[%c1, %c0_14], %24 {strides = array<i32>} : memref<8x256xf32, #tpu.memory_space<vmem>>, vector<1x256xf32>,
    %26 = vector.extract_strided_slice %3 {offsets = [0, 0], sizes = [1, 256], strides = [1, 1]} : vector<8x256xf32> to vector<1x256xf32>
    %cst_15 = arith.constant -2.500000e-01 : f32
    %27 = vector.broadcast %cst_15 : f32 to vector<1x256xf32>
    %28 = arith.mulf %27, %26 : vector<1x256xf32>
    %29 = vector.extract_strided_slice %3 {offsets = [1, 0], sizes = [1, 256], strides = [1, 1]} : vector<8x256xf32> to vector<1x256xf32>
    %cst_16 = arith.constant 5.000000e-01 : f32
    %30 = vector.broadcast %cst_16 : f32 to vector<1x256xf32>
    %31 = arith.mulf %30, %29 : vector<1x256xf32>
    %32 = arith.addf %28, %31 : vector<1x256xf32>
    %33 = vector.extract_strided_slice %3 {offsets = [2, 0], sizes = [1, 256], strides = [1, 1]} : vector<8x256xf32> to vector<1x256xf32>
    %cst_17 = arith.constant -2.500000e-01 : f32
    %34 = vector.broadcast %cst_17 : f32 to vector<1x256xf32>
    %35 = arith.mulf %34, %33 : vector<1x256xf32>
    %36 = arith.addf %32, %35 : vector<1x256xf32>
    %c2 = arith.constant 2 : index
    %c0_18 = arith.constant 0 : index
    %37 = vector.load %arg5[%c2, %c0_18] : memref<8x256xf32, #tpu.memory_space<vmem>>, vector<1x256xf32>
    tpu.vector_store %arg5[%c2, %c0_18], %36 {strides = array<i32>} : memref<8x256xf32, #tpu.memory_space<vmem>>, vector<1x256xf32>,
    %38 = vector.extract_strided_slice %3 {offsets = [3, 0], sizes = [1, 256], strides = [1, 1]} : vector<8x256xf32> to vector<1x256xf32>
    %cst_19 = arith.constant 0.333333343 : f32
    %39 = vector.broadcast %cst_19 : f32 to vector<1x256xf32>
    %40 = arith.mulf %39, %38 : vector<1x256xf32>
    %41 = vector.extract_strided_slice %3 {offsets = [4, 0], sizes = [1, 256], strides = [1, 1]} : vector<8x256xf32> to vector<1x256xf32>
    %cst_20 = arith.constant 0.333333343 : f32
    %42 = vector.broadcast %cst_20 : f32 to vector<1x256xf32>
    %43 = arith.mulf %42, %41 : vector<1x256xf32>
    %44 = arith.addf %40, %43 : vector<1x256xf32>
    %45 = vector.extract_strided_slice %3 {offsets = [5, 0], sizes = [1, 256], strides = [1, 1]} : vector<8x256xf32> to vector<1x256xf32>
    %cst_21 = arith.constant 0.333333343 : f32
    %46 = vector.broadcast %cst_21 : f32 to vector<1x256xf32>
    %47 = arith.mulf %46, %45 : vector<1x256xf32>
    %48 = arith.addf %44, %47 : vector<1x256xf32>
    %c3 = arith.constant 3 : index
    %c0_22 = arith.constant 0 : index
    %49 = vector.load %arg5[%c3, %c0_22] : memref<8x256xf32, #tpu.memory_space<vmem>>, vector<1x256xf32>
    tpu.vector_store %arg5[%c3, %c0_22], %48 {strides = array<i32>} : memref<8x256xf32, #tpu.memory_space<vmem>>, vector<1x256xf32>,
    %50 = vector.extract_strided_slice %3 {offsets = [3, 0], sizes = [1, 256], strides = [1, 1]} : vector<8x256xf32> to vector<1x256xf32>
    %cst_23 = arith.constant 5.000000e-01 : f32
    %51 = vector.broadcast %cst_23 : f32 to vector<1x256xf32>
    %52 = arith.mulf %51, %50 : vector<1x256xf32>
    %53 = vector.extract_strided_slice %3 {offsets = [5, 0], sizes = [1, 256], strides = [1, 1]} : vector<8x256xf32> to vector<1x256xf32>
    %cst_24 = arith.constant -5.000000e-01 : f32
    %54 = vector.broadcast %cst_24 : f32 to vector<1x256xf32>
    %55 = arith.mulf %54, %53 : vector<1x256xf32>
    %56 = arith.addf %52, %55 : vector<1x256xf32>
    %c4 = arith.constant 4 : index
    %c0_25 = arith.constant 0 : index
    %57 = vector.load %arg5[%c4, %c0_25] : memref<8x256xf32, #tpu.memory_space<vmem>>, vector<1x256xf32>
    tpu.vector_store %arg5[%c4, %c0_25], %56 {strides = array<i32>} : memref<8x256xf32, #tpu.memory_space<vmem>>, vector<1x256xf32>,
    %58 = vector.extract_strided_slice %3 {offsets = [3, 0], sizes = [1, 256], strides = [1, 1]} : vector<8x256xf32> to vector<1x256xf32>
    %cst_26 = arith.constant -2.500000e-01 : f32
    %59 = vector.broadcast %cst_26 : f32 to vector<1x256xf32>
    %60 = arith.mulf %59, %58 : vector<1x256xf32>
    %61 = vector.extract_strided_slice %3 {offsets = [4, 0], sizes = [1, 256], strides = [1, 1]} : vector<8x256xf32> to vector<1x256xf32>
    %cst_27 = arith.constant 5.000000e-01 : f32
    %62 = vector.broadcast %cst_27 : f32 to vector<1x256xf32>
    %63 = arith.mulf %62, %61 : vector<1x256xf32>
    %64 = arith.addf %60, %63 : vector<1x256xf32>
    %65 = vector.extract_strided_slice %3 {offsets = [5, 0], sizes = [1, 256], strides = [1, 1]} : vector<8x256xf32> to vector<1x256xf32>
    %cst_28 = arith.constant -2.500000e-01 : f32
    %66 = vector.broadcast %cst_28 : f32 to vector<1x256xf32>
    %67 = arith.mulf %66, %65 : vector<1x256xf32>
    %68 = arith.addf %64, %67 : vector<1x256xf32>
    %c5 = arith.constant 5 : index
    %c0_29 = arith.constant 0 : index
    %69 = vector.load %arg5[%c5, %c0_29] : memref<8x256xf32, #tpu.memory_space<vmem>>, vector<1x256xf32>
    tpu.vector_store %arg5[%c5, %c0_29], %68 {strides = array<i32>} : memref<8x256xf32, #tpu.memory_space<vmem>>, vector<1x256xf32>,
    %cst_30 = arith.constant 0.000000e+00 : f32
    %70 = vector.broadcast %cst_30 : f32 to vector<2x256xf32>
    %c6 = arith.constant 6 : index
    %c0_31 = arith.constant 0 : index
    %71 = vector.load %arg5[%c6, %c0_31] : memref<8x256xf32, #tpu.memory_space<vmem>>, vector<2x256xf32>
    tpu.vector_store %arg5[%c6, %c0_31], %70 {strides = array<i32>} : memref<8x256xf32, #tpu.memory_space<vmem>>, vector<2x256xf32>,
    return
  }
  func.func @transform_0(%arg0: i32) -> (i32, i32) {
    %c0_i32 = arith.constant 0 : i32
    %c0_i32_0 = arith.constant 0 : i32
    %c0_i32_1 = arith.constant 0 : i32
    return %c0_i32, %c0_i32_0 : i32, i32
  }
  func.func @transform_1(%arg0: i32) -> (i32, i32) {
    %c0_i32 = arith.constant 0 : i32
    %c0_i32_0 = arith.constant 0 : i32
    %c0_i32_1 = arith.constant 0 : i32
    return %c0_i32, %c0_i32_0 : i32, i32
  }
  func.func @transform_2(%arg0: i32) -> (i32, i32) {
    %c0_i32 = arith.constant 0 : i32
    %c0_i32_0 = arith.constant 0 : i32
    %c0_i32_1 = arith.constant 0 : i32
    return %c0_i32, %c0_i32_0 : i32, i32
  }
  func.func @transform_3(%arg0: i32) -> (i32, i32) {
    %c0_i32 = arith.constant 0 : i32
    %c0_i32_0 = arith.constant 0 : i32
    %c0_i32_1 = arith.constant 0 : i32
    return %c0_i32, %c0_i32_0 : i32, i32
  }
  func.func @transform_4(%arg0: i32) -> (i32, i32) {
    %c0_i32 = arith.constant 0 : i32
    %c0_i32_0 = arith.constant 0 : i32
    %c0_i32_1 = arith.constant 0 : i32
    return %c0_i32, %c0_i32_0 : i32, i32
  }
}

</mosaic_0001>

<bundles_post_ra>
// kernel: tpu_custom_call.1
= control target key start
LH: loop header
LB: loop body
LE: loop exit
PB: predicated region body
PF: predicated region fallthrough
CT: control target
= control target key end

     0   :  { %10 = vsyncpa [#allocation3], 0  ;;  %s569_s0 = inlined_call_operand.hbm [shape: f32[8,256], index: 0, kind: input, shape index: {}]   ;;  %s570_s1 = inlined_call_operand.hbm [shape: f32[256,256], index: 1, kind: input, shape index: {}]   ;;  %s571_s2 = inlined_call_operand.hbm [shape: f32[8,256], index: 2, kind: output, shape index: {0}]   ;;  %s572_s3 = inlined_call_operand.hbm [shape: f32[8,256], index: 3, kind: output, shape index: {1}]   ;;  %s573_s4 = inlined_call_operand.hbm [shape: f32[8,256], index: 4, kind: output, shape index: {2}]  }
   0x1   :  { %11 = vsyncpa [#allocation6], 0 }
   0x2   :  { %12 = vsyncpa [#allocation4], 0 }
   0x3   :  { %13 = vsyncpa [#allocation9], 0  ;;  %s498_s15 = smov [#allocation2]   ;;  %s499_s17 = smov [#allocation5]  }
   0x4   :  { %s20_s16 = sshll.u32 %s498_s15, 4  ;;  %s29_s18 = sshll.u32 %s499_s17, 4  ;;  %s21_s16 = int_to_ptr.vmem [resolvable:$true] %s20_s16  ;;  %s30_s18 = int_to_ptr.vmem [resolvable:$true] %s29_s18 }
   0x5   :  { %s398_s19 = scalar_lea.vmem %s21_s16, 256  ;;  %p403_p1 = scmp.lt.s32.totalorder %s21_s16, %s21_s16 }
   0x6   :  { %p399_p0 = scmp.ne.s32.totalorder %s21_s16, %s398_s19  ;;  %p404_p2 = scmp.lt.s32.totalorder %s398_s19, %s398_s19 }
   0x8   :  { %p405_p3 = por %p404_p2, %p403_p1 }
   0xa   :  { %p406_p4 = pnand %p405_p3, %p399_p0 }
   0xc   :  { %409 = shalt.err (!%p406_p4)
}
   0xd   :  { %23 = dma.hbm_to_vmem [thread:$0]  %s569_s0, 256, %s21_s16, [#allocation3]  }
   0xe   :  { %s418_s22 = scalar_lea.vmem %s30_s18, 8192  ;;  %p423_p6 = scmp.lt.s32.totalorder %s30_s18, %s30_s18 }
   0xf   :  { %p419_p5 = scmp.ne.s32.totalorder %s30_s18, %s418_s22  ;;  %p424_p7 = scmp.lt.s32.totalorder %s418_s22, %s418_s22 }
  0x11   :  { %p425_p8 = por %p424_p7, %p423_p6 }
  0x13   :  { %p426_p9 = pnand %p425_p8, %p419_p5 }
  0x15   :  { %429 = shalt.err (!%p426_p9)
}
  0x16   :  { %s500_s23 = smov 256   ;;  %s501_s24 = smov 16  }
  0x17   :  { %35 = dma.hbm_to_vmem [thread:$0]  %s570_s1, 8192, %s30_s18, [#allocation6], %s500_s23, %s500_s23, %s501_s24  }
  0x18   :  { %490 = dma.done.wait [#allocation3], 256  }
  0x19   :  { %491 = vsyncadd [#allocation3], 4294967040 }
  0x1a   :  { %492 = dma.done.wait [#allocation6], 8192  }
  0x1b   :  { %493 = vsyncadd [#allocation6], 4294959104  ;;  %v75_v0 = vld [vmem:[#allocation5 + $0xf8] sm:$0xff]  ;;  %v74_v1 = vld [vmem:[#allocation5 + $0xf0] sm:$0xff]  ;;  %s504_s0 = smov [#allocation7]   ;;  %s505_s27 = smov [#allocation8]  }
  0x1c   :  { %v73_v2 = vld [vmem:[#allocation5 + $0xe8] sm:$0xff]  ;;  %108 = vmatprep.subr.mxu0 %v75_v0  ;;  %v72_v3 = vld [vmem:[#allocation5 + $0xe0] sm:$0xff]  ;;  %v71_v4 = vld [vmem:[#allocation5 + $0xd8] sm:$0xff]  ;;  %s344_s1 = sshll.u32 %s504_s0, 4  ;;  %s354_s28 = sshll.u32 %s505_s27, 4  ;;  %s345_s1 = int_to_ptr.vmem [resolvable:$true] %s344_s1  ;;  %s355_s28 = int_to_ptr.vmem [resolvable:$true] %s354_s28 }
  0x1d   :  { %109 = vmatpush1.msra.mxu0 %v74_v1  ;;  %v70_v5 = vld [vmem:[#allocation5 + $0xd0] sm:$0xff]  ;;  %v69_v6 = vld [vmem:[#allocation5 + $0xc8] sm:$0xff]  ;;  %v68_v7 = vld [vmem:[#allocation5 + $0xc0] sm:$0xff]  ;;  %s430_s29 = scalar_lea.vmem %s345_s1, 256  ;;  %p435_p11 = scmp.lt.s32.totalorder %s345_s1, %s345_s1 }
  0x1e   :  { %110 = vmatprep.subr.mxu0 %v73_v2  ;;  %v67_v8 = vld [vmem:[#allocation5 + $0xb8] sm:$0xff]  ;;  %v66_v9 = vld [vmem:[#allocation5 + $0xb0] sm:$0xff]  ;;  %v65_v10 = vld [vmem:[#allocation5 + $0xa8] sm:$0xff]  ;;  %v502_v2 = vmov 0.0   ;;  %p431_p10 = scmp.ne.s32.totalorder %s345_s1, %s430_s29  ;;  %p436_p12 = scmp.lt.s32.totalorder %s430_s29, %s430_s29 }
  0x1f   :  { %111 = vmatpush1.msra.mxu0 %v72_v3  ;;  %v64_v11 = vld [vmem:[#allocation5 + $0xa0] sm:$0xff]  ;;  %v63_v12 = vld [vmem:[#allocation5 + $0x98] sm:$0xff]  ;;  %v62_v13 = vld [vmem:[#allocation5 + $0x90] sm:$0xff]  ;;  %336 = vst [vmem:[#allocation10] sm:$0xc0] %v502_v2 }
  0x20   :  { %112 = vmatprep.subr.mxu0 %v71_v4  ;;  %v61_v14 = vld [vmem:[#allocation5 + $0x88] sm:$0xff]  ;;  %v60_v15 = vld [vmem:[#allocation5 + $0x80] sm:$0xff]  ;;  %v59_v16 = vld [vmem:[#allocation5 + $0x78] sm:$0xff]  ;;  %337 = vst [vmem:[#allocation10 + $0x8] sm:$0xc0] %v502_v2  ;;  %p437_p13 = por %p436_p12, %p435_p11 }
  0x21   :  { %113 = vmatpush1.msra.mxu0 %v70_v5  ;;  %v58_v17 = vld [vmem:[#allocation5 + $0x70] sm:$0xff]  ;;  %v57_v18 = vld [vmem:[#allocation5 + $0x68] sm:$0xff]  ;;  %v56_v19 = vld [vmem:[#allocation5 + $0x60] sm:$0xff]  ;;  %v503_v3 = vmov 1966171168   ;;  %v207_v5 = vlaneseq }
  0x22   :  { %114 = vmatprep.subr.mxu0 %v69_v6  ;;  %v55_v20 = vld [vmem:[#allocation5 + $0x58] sm:$0xff]  ;;  %v54_v21 = vld [vmem:[#allocation5 + $0x50] sm:$0xff]  ;;  %v53_v22 = vld [vmem:[#allocation5 + $0x48] sm:$0xff]  ;;  %v205_v4 = vunpack.c.l.s4 %v503_v3  ;;  %p438_p0 = pnand %p437_p13, %p431_p10 }
  0x23   :  { %115 = vmatpush1.msra.mxu0 %v68_v7  ;;  %v52_v23 = vld [vmem:[#allocation5 + $0x40] sm:$0xff]  ;;  %v538_v24 = vld [vmem:[#allocation2 + $0x8] sm:$0xff]  ;;  %v50_v26 = vld [vmem:[#allocation5 + $0x30] sm:$0xff] }
  0x24   :  { %116 = vmatprep.subr.mxu0 %v67_v8  ;;  %v51_v25 = vld [vmem:[#allocation5 + $0x38] sm:$0xff]  ;;  %172 = vmatprep.mubr.f32.mxu0 %v538_v24  ;;  %v49_v27 = vld [vmem:[#allocation5 + $0x28] sm:$0xff]  ;;  %v48_v28 = vld [vmem:[#allocation5 + $0x20] sm:$0xff] }
  0x25   :  { %117 = vmatpush1.msra.mxu0 %v66_v9  ;;  %v47_v29 = vld [vmem:[#allocation5 + $0x18] sm:$0xff]  ;;  %v46_v30 = vld [vmem:[#allocation5 + $0x10] sm:$0xff]  ;;  %v45_v31 = vld [vmem:[#allocation5 + $0x8] sm:$0xff]  ;;  %v206_v9 = vunpack.c.0.s8 %v205_v4 }
  0x26   :  { %118 = vmatprep.subr.mxu0 %v65_v10  ;;  %v44_v32 = vld [vmem:[#allocation5] sm:$0xff]  ;;  %v107_v33 = vld [vmem:[#allocation5 + $0x1f8] sm:$0xff]  ;;  %v106_v34 = vld [vmem:[#allocation5 + $0x1f0] sm:$0xff] }
  0x27   :  { %119 = vmatpush1.msra.mxu0 %v64_v11  ;;  %v105_v35 = vld [vmem:[#allocation5 + $0x1e8] sm:$0xff]  ;;  %v104_v36 = vld [vmem:[#allocation5 + $0x1e0] sm:$0xff]  ;;  %v103_v37 = vld [vmem:[#allocation5 + $0x1d8] sm:$0xff] }
  0x28   :  { %120 = vmatprep.subr.mxu0 %v63_v12  ;;  %v102_v38 = vld [vmem:[#allocation5 + $0x1d0] sm:$0xff]  ;;  %v101_v39 = vld [vmem:[#allocation5 + $0x1c8] sm:$0xff]  ;;  %v100_v40 = vld [vmem:[#allocation5 + $0x1c0] sm:$0xff] }
  0x29   :  { %121 = vmatpush1.msra.mxu0 %v62_v13  ;;  %v99_v41 = vld [vmem:[#allocation5 + $0x1b8] sm:$0xff]  ;;  %v98_v42 = vld [vmem:[#allocation5 + $0x1b0] sm:$0xff]  ;;  %v97_v43 = vld [vmem:[#allocation5 + $0x1a8] sm:$0xff]  ;;  %v208_v13 = vshrl.u32 %v207_v5, 7 }
  0x2a   :  { %122 = vmatprep.subr.mxu0 %v61_v14  ;;  %v96_v44 = vld [vmem:[#allocation5 + $0x1a0] sm:$0xff]  ;;  %v95_v45 = vld [vmem:[#allocation5 + $0x198] sm:$0xff]  ;;  %v94_v46 = vld [vmem:[#allocation5 + $0x190] sm:$0xff] }
  0x2b   :  { %123 = vmatpush1.msra.mxu0 %v60_v15  ;;  %v93_v47 = vld [vmem:[#allocation5 + $0x188] sm:$0xff]  ;;  %v92_v48 = vld [vmem:[#allocation5 + $0x180] sm:$0xff]  ;;  %v91_v49 = vld [vmem:[#allocation5 + $0x178] sm:$0xff] }
  0x2c   :  { %124 = vmatprep.subr.mxu0 %v59_v16  ;;  %v90_v50 = vld [vmem:[#allocation5 + $0x170] sm:$0xff]  ;;  %v89_v51 = vld [vmem:[#allocation5 + $0x168] sm:$0xff]  ;;  %v88_v52 = vld [vmem:[#allocation5 + $0x160] sm:$0xff] }
  0x2d   :  { %125 = vmatpush1.msra.mxu0 %v58_v17  ;;  %v87_v53 = vld [vmem:[#allocation5 + $0x158] sm:$0xff]  ;;  %v86_v54 = vld [vmem:[#allocation5 + $0x150] sm:$0xff]  ;;  %v85_v55 = vld [vmem:[#allocation5 + $0x148] sm:$0xff] }
  0x2e   :  { %126 = vmatprep.subr.mxu0 %v57_v18  ;;  %v84_v56 = vld [vmem:[#allocation5 + $0x140] sm:$0xff]  ;;  %v83_v57 = vld [vmem:[#allocation5 + $0x138] sm:$0xff]  ;;  %v82_v58 = vld [vmem:[#allocation5 + $0x130] sm:$0xff] }
  0x2f   :  { %127 = vmatpush1.msra.mxu0 %v56_v19  ;;  %v81_v59 = vld [vmem:[#allocation5 + $0x128] sm:$0xff]  ;;  %v80_v60 = vld [vmem:[#allocation5 + $0x120] sm:$0xff]  ;;  %v79_v61 = vld [vmem:[#allocation5 + $0x118] sm:$0xff] }
  0x30   :  { %128 = vmatprep.subr.mxu0 %v55_v20  ;;  %v78_v62 = vld [vmem:[#allocation5 + $0x110] sm:$0xff]  ;;  %v77_v63 = vld [vmem:[#allocation5 + $0x108] sm:$0xff]  ;;  %v76_v0 = vld [vmem:[#allocation5 + $0x100] sm:$0xff] }
  0x31   :  { %129 = vmatpush1.msra.mxu0 %v54_v21  ;;  %v42_v1 = vld [vmem:[#allocation2] sm:$0xff] }
  0x32   :  { %130 = vmatprep.subr.mxu0 %v53_v22 }
  0x33   :  { %131 = vmatpush1.msra.mxu0 %v52_v23 }
  0x34   :  { %132 = vmatprep.subr.mxu0 %v51_v25 }
  0x35   :  { %133 = vmatpush1.msra.mxu0 %v50_v26 }
  0x36   :  { %134 = vmatprep.subr.mxu0 %v49_v27 }
  0x37   :  { %135 = vmatpush1.msra.mxu0 %v48_v28 }
  0x38   :  { %136 = vmatprep.subr.mxu0 %v47_v29 }
  0x39   :  { %137 = vmatpush1.msra.mxu0 %v46_v30 }
  0x3a   :  { %138 = vmatprep.subr.mxu0 %v45_v31 }
  0x3b   :  { %139 = vmatpush1.msra.mxu0 %v44_v32 }
  0x3c   :  { %140 = vmatprep.subr.mxu0 %v107_v33 }
  0x3d   :  { %141 = vmatpush2.msra.mxu0 %v106_v34 }
  0x3e   :  { %142 = vmatprep.subr.mxu0 %v105_v35 }
  0x3f   :  { %143 = vmatpush2.msra.mxu0 %v104_v36 }
  0x40   :  { %144 = vmatprep.subr.mxu0 %v103_v37 }
  0x41   :  { %145 = vmatpush2.msra.mxu0 %v102_v38 }
  0x42   :  { %146 = vmatprep.subr.mxu0 %v101_v39 }
  0x43   :  { %147 = vmatpush2.msra.mxu0 %v100_v40 }
  0x44   :  { %148 = vmatprep.subr.mxu0 %v99_v41 }
  0x45   :  { %149 = vmatpush2.msra.mxu0 %v98_v42 }
  0x46   :  { %150 = vmatprep.subr.mxu0 %v97_v43 }
  0x47   :  { %151 = vmatpush2.msra.mxu0 %v96_v44 }
  0x48   :  { %152 = vmatprep.subr.mxu0 %v95_v45 }
  0x49   :  { %153 = vmatpush2.msra.mxu0 %v94_v46 }
  0x4a   :  { %154 = vmatprep.subr.mxu0 %v93_v47 }
  0x4b   :  { %155 = vmatpush2.msra.mxu0 %v92_v48 }
  0x4c   :  { %156 = vmatprep.subr.mxu0 %v91_v49 }
  0x4d   :  { %157 = vmatpush2.msra.mxu0 %v90_v50 }
  0x4e   :  { %158 = vmatprep.subr.mxu0 %v89_v51 }
  0x4f   :  { %159 = vmatpush2.msra.mxu0 %v88_v52 }
  0x50   :  { %160 = vmatprep.subr.mxu0 %v87_v53 }
  0x51   :  { %161 = vmatpush2.msra.mxu0 %v86_v54 }
  0x52   :  { %162 = vmatprep.subr.mxu0 %v85_v55 }
  0x53   :  { %163 = vmatpush2.msra.mxu0 %v84_v56 }
  0x54   :  { %164 = vmatprep.subr.mxu0 %v83_v57 }
  0x55   :  { %165 = vmatpush2.msra.mxu0 %v82_v58 }
  0x56   :  { %166 = vmatprep.subr.mxu0 %v81_v59 }
  0x57   :  { %167 = vmatpush2.msra.mxu0 %v80_v60 }
  0x58   :  { %168 = vmatprep.subr.mxu0 %v79_v61 }
  0x59   :  { %169 = vmatpush2.msra.mxu0 %v78_v62 }
  0x5a   :  { %170 = vmatprep.subr.mxu0 %v77_v63 }
  0x5b   :  { %171 = vmatpush2.msra.mxu0 %v76_v0 }
  0x5c   :  { %173 = vmatmul.mubr.f32.vlgmr.msra.gmra.mxu0 %v42_v1 }
 0x11c   :  { %v174_v6 = vpop.f32.mrf.mxu0 }
 0x11d   :  { %v179_v7 = vsub.f32 %v42_v1, %v174_v6  ;;  %181 = vst [vmem:[#allocation7] sm:$0xff] %v174_v6 }
 0x11e   :  { %v176_v8 = vpop.f32.mrf.mxu0 }
 0x11f   :  { %v185_v10 = vmul.f32 0.33333334, %v179_v7  ;;  %v225_v11 = vmul.f32 0.5, %v179_v7  ;;  %v227_v12 = vmul.f32 -0.5, %v179_v7  ;;  %183 = vst [vmem:[#allocation8] sm:$0xff] %v179_v7  ;;  %182 = vst [vmem:[#allocation7 + $0x8] sm:$0xff] %v176_v8  ;;  %v180_v14 = vsub.f32 %v538_v24, %v176_v8 }
 0x120   :  { %441 = shalt.err (!%p438_p0)
}
 0x121   :  { %347 = dma.vmem_to_hbm [thread:$0]  %s345_s1, 256, %s571_s2, [#allocation4]   ;;  %v189_v15 = vrot.slane %v185_v10, 1  ;;  %v231_v16 = vrot.slane %v227_v12, 2  ;;  %v258_v17 = vmul.f32 -0.25, %v179_v7  ;;  %v262_v18 = vrot.slane %v225_v11, 1 }
 0x122   :  { %v186_v19 = vmul.f32 0.33333334, %v180_v14  ;;  %v226_v20 = vmul.f32 0.5, %v180_v14  ;;  %v228_v21 = vmul.f32 -0.5, %v180_v14  ;;  %184 = vst [vmem:[#allocation8 + $0x8] sm:$0xff] %v180_v14  ;;  %v209_v23 = vsub.s32 %v206_v9, %v208_v13  ;;  %s450_s6 = scalar_lea.vmem %s355_s28, 256  ;;  %p455_p2 = scmp.lt.s32.totalorder %s355_s28, %s355_s28 }
 0x123   :  { %v193_v22 = vadd.f32 %v189_v15, %v185_v10  ;;  %v259_v24 = vmul.f32 -0.25, %v180_v14  ;;  %p451_p1 = scmp.ne.s32.totalorder %s355_s28, %s450_s6  ;;  %p456_p3 = scmp.lt.s32.totalorder %s450_s6, %s450_s6 }
 0x125   :  { %p457_p4 = por %p456_p3, %p455_p2 }
 0x127   :  { %p458_p5 = pnand %p457_p4, %p451_p1 }
 0x129   :  { %461 = shalt.err (!%p458_p5)
}
 0x12a   :  { %357 = dma.vmem_to_hbm [thread:$0]  %s355_s28, 256, %s572_s3, [#allocation9]   ;;  %v266_v25 = vadd.f32 %v262_v18, %v258_v17  ;;  %v190_v26 = vrot.slane %v186_v19, 1  ;;  %v232_v27 = vrot.slane %v228_v21, 2  ;;  %v263_v28 = vrot.slane %v226_v20, 1 }
 0x12b   :  { %v195_v29 = vrot.slane %v185_v10, 2  ;;  %v235_v30 = vadd.f32 %v231_v16, %v225_v11  ;;  %v270_v31 = vrot.slane %v258_v17, 2  ;;  %v196_v32 = vrot.slane %v186_v19, 2  ;;  %s506_s3 = smov [#allocation10]  }
 0x12c   :  { %v194_v33 = vadd.f32 %v190_v26, %v186_v19  ;;  %v236_v34 = vadd.f32 %v232_v27, %v226_v20  ;;  %v267_v35 = vadd.f32 %v263_v28, %v259_v24  ;;  %v271_v36 = vrot.slane %v259_v24, 2  ;;  %s364_s8 = sshll.u32 %s506_s3, 4  ;;  %s365_s8 = int_to_ptr.vmem [resolvable:$true] %s364_s8 }
 0x12d   :  { %v199_v37 = vadd.f32 %v195_v29, %v193_v22  ;;  %v274_v38 = vadd.f32 %v270_v31, %v266_v25  ;;  %vm550_vm0 = vcmp.lt.s32.totalorder %v207_v5, 256  ;;  %s470_s9 = scalar_lea.vmem %s365_s8, 256  ;;  %p475_p7 = scmp.lt.s32.totalorder %s365_s8, %s365_s8 }
 0x12e   :  { %v200_v39 = vadd.f32 %v196_v32, %v194_v33  ;;  %v239_v40 = vcombine.low %v235_v30, %v236_v34  ;;  %v275_v41 = vadd.f32 %v271_v36, %v267_v35  ;;  %p471_p6 = scmp.ne.s32.totalorder %s365_s8, %s470_s9  ;;  %p476_p8 = scmp.lt.s32.totalorder %s470_s9, %s470_s9 }
 0x130   :  { %v203_v42 = vcombine.low %v199_v37, %v200_v39  ;;  %v246_v43 = vrot.slane %v239_v40, %v209_v23  ;;  %v278_v44 = vcombine.low %v274_v38, %v275_v41  ;;  %p477_p9 = por %p476_p8, %p475_p7 }
 0x132   :  { %v210_v46 = vrot.slane %v203_v42, %v209_v23  ;;  %v253_v47 = vrot.slane %v246_v43, %v209_v23  ;;  %v285_v48 = vrot.slane %v278_v44, %v209_v23  ;;  %v310_v49 = vcombine.high %v246_v43, %v246_v43  ;;  %p478_p10 = pnand %p477_p9, %p471_p6 }
 0x134   :  { %v217_v50 = vrot.slane %v210_v46, %v209_v23  ;;  %256 = vst.msk [vmem:[#allocation10 + $0x1] ss:$8 sm:$0x3] %vm550_vm0, %v253_v47  ;;  %v292_v51 = vrot.slane %v285_v48, %v209_v23  ;;  %v297_v52 = vcombine.high %v210_v46, %v210_v46  ;;  %v317_v53 = vrot.slane %v310_v49, %v209_v23 }
 0x135   :  { %v323_v54 = vcombine.high %v285_v48, %v285_v48 }
 0x136   :  { %295 = vst.msk [vmem:[#allocation10 + $0x2] ss:$8 sm:$0x3] %vm550_vm0, %v292_v51  ;;  %v304_v55 = vrot.slane %v297_v52, %v209_v23  ;;  %v318_v56 = vcombine.high %v317_v53, %v317_v53  ;;  %223 = vst.msk [vmem:[#allocation10] ss:$8 sm:$0x3] %vm550_vm0, %v217_v50 }
 0x137   :  { %v330_v57 = vrot.slane %v323_v54, %v209_v23 }
 0x138   :  { %v305_v58 = vcombine.high %v304_v55, %v304_v55  ;;  %321 = vst.msk [vmem:[#allocation10 + $0x4] ss:$8 sm:$0x3] %vm550_vm0, %v318_v56 }
 0x139   :  { %v331_v59 = vcombine.high %v330_v57, %v330_v57 }
 0x13a   :  { %308 = vst.msk [vmem:[#allocation10 + $0x3] ss:$8 sm:$0x3] %vm550_vm0, %v305_v58 }
 0x13b   :  { %334 = vst.msk [vmem:[#allocation10 + $0x5] ss:$8 sm:$0x3] %vm550_vm0, %v331_v59 }
 0x13c   :  { %481 = shalt.err (!%p478_p10)
}
 0x13d   :  { %367 = dma.vmem_to_hbm [thread:$0]  %s365_s8, 256, %s573_s4, [#allocation9]  }
 0x13e   :  { %494 = dma.done.wait [#allocation4], 256  }
 0x13f   :  { %495 = vsyncadd [#allocation4], 4294967040 }
 0x140   :  { %496 = dma.done.wait [#allocation9], 512  }
 0x141   :  { %497 = vsyncadd [#allocation9], 4294966784 }
 0x142   :  { %377 = vsyncpa [#allocation3], 1 }
 0x143   :  { %378 = vsyncpa [#allocation6], 1 }
 0x144   :  { %379 = vsyncpa [#allocation4], 1 }
 0x145   :  { %380 = vsyncpa [#allocation9], 1 }

</bundles_post_ra>
